<compile_context>
chip_gen: v7x
topology: tpu7x:2x2x1
jax: 0.10.0
libtpu: 0.0.40
codegen_flags: <defaults>
</compile_context>

<pallas_src>
import jax
import jax.numpy as jnp
from jax.experimental import pallas as pl
from jax.experimental.pallas import tpu as pltpu

_EPS = 1e-8
_FOUR_PI = float(4.0 * jnp.pi)
_LANES = 128
_SUBLANES = 8
_SCALARS_PER_BATCH = 32  # 18 pose/light + 13 derived constants + 1 pad


def _shading_kernel(scal_ref, p_ref, out_ref):
    # scal_ref: SMEM (B*32,) flat per-batch scalars (scalar prefetch)
    # p_ref   : VMEM (3, R, 128) SoA coordinate slab for this (batch, tile)
    # out_ref : VMEM (R, 128)
    base = pl.program_id(0) * _SCALARS_PER_BATCH
    s = lambda i: scal_ref[base + i]

    r00, r01, r02 = s(0), s(1), s(2)
    r10, r11, r12 = s(3), s(4), s(5)
    r20, r21, r22 = s(6), s(7), s(8)
    tx, ty, tz = s(9), s(10), s(11)          # t_w2c
    cx, cy, cz = s(12), s(13), s(14)         # t_c2w (camera center in world)
    lx, ly, lz = s(15), s(16), s(17)         # light position in world
    albedo = s(18)
    ambient = s(19)
    a2 = s(20)                               # roughness^4
    kk = s(21)                               # alpha / 2
    one_m_k = s(22)
    f0 = s(23)
    one_m_f0 = s(24)
    kd_over_pi = s(25)
    ks = s(26)
    light_i = s(27)
    inv_2s2 = s(28)                          # 1 / (2 sigma^2)
    mu_x = s(29)
    mu_y = s(30)

    px = p_ref[0]                            # (R, 128) dense slabs
    py = p_ref[1]
    pz = p_ref[2]

    # ---------- camera-frame transform + Gaussian numerators first ----------
    # (frees xc/yc/gx/gy immediately; only g2 and zc2/zc_safe stay live)
    xc = r00 * px + r01 * py + r02 * pz + tx
    yc = r10 * px + r11 * py + r12 * pz + ty
    zc = r20 * px + r21 * py + r22 * pz + tz
    zc_safe = zc + jnp.where(zc >= 0.0, _EPS, -_EPS)   # sign-preserving guard
    gx = xc - mu_x * zc_safe
    gy = yc - mu_y * zc_safe
    g2 = gx * gx + gy * gy
    zc2 = zc_safe * zc_safe

    # ---------- world-frame directions (px/py/pz die here) ----------
    ldx = lx - px
    ldy = ly - py
    ldz = lz - pz
    vdx = cx - px
    vdy = cy - py
    vdz = cz - pz
    inv_ln = jax.lax.rsqrt(ldx * ldx + ldy * ldy + ldz * ldz + _EPS)
    inv_vn = jax.lax.rsqrt(vdx * vdx + vdy * vdy + vdz * vdz + _EPS)
    lxn, lyn, lzn = ldx * inv_ln, ldy * inv_ln, ldz * inv_ln
    vxn, vyn, vzn = vdx * inv_vn, vdy * inv_vn, vdz * inv_vn

    # fixed surface normal n = (0, 0, -1)  =>  n . x = -x_z
    ndl = jnp.maximum(-lzn, 0.0)
    ndv = jnp.maximum(-vzn, 0.0)

    # half-vector terms algebraically: |l+v|^2 = 2 + 2 l.v
    l_dot_v = lxn * vxn + lyn * vyn + lzn * vzn
    inv_hn = jax.lax.rsqrt(2.0 + 2.0 * l_dot_v + _EPS)
    ndh = jnp.maximum(-(lzn + vzn) * inv_hn, 0.0)
    vdh = jnp.maximum((1.0 + l_dot_v) * inv_hn, 0.0)

    # ---------- Microfacet reflectance (Cook-Torrance, GGX) ----------
    dden = ndh * ndh * (a2 - 1.0) + 1.0
    gden_v = ndv * one_m_k + kk
    gden_l = ndl * one_m_k + kk
    one_m = 1.0 - vdh
    one_m2 = one_m * one_m
    fres = f0 + one_m_f0 * (one_m2 * one_m2 * one_m)
    ndv_ndl = ndv * ndl
    denom = (_FOUR_PI * dden * dden) * gden_v * gden_l * ndv_ndl + _EPS

    # single merged approx reciprocal for the BRDF denominator and 1/zc^2
    r = pl.reciprocal(denom * zc2, approx=True)
    inv_denom = r * zc2
    inv_zc2 = r * denom

    spec = (a2 * fres) * ndv_ndl * inv_denom
    reflectance = (kd_over_pi + ks * spec) * ndl

    # ---------- Gaussian2D light: angular Gaussian * inverse-square falloff ----------
    gauss = jnp.exp(-(g2 * inv_zc2) * inv_2s2)
    atten = inv_ln * inv_ln                  # 1 / |p_light - p|^2
    incident = light_i * gauss * atten

    reflected = albedo * reflectance * (incident + ambient)
    out_ref[...] = jnp.clip(reflected, 0.0, 255.0)


def so3_exp(rvec):
    """Batched Rodrigues: axis-angle (B, 3) -> rotation matrices (B, 3, 3)."""
    theta2 = jnp.sum(rvec * rvec, axis=-1)
    theta = jnp.sqrt(theta2)
    small = theta < 1e-6
    safe_t = jnp.where(small, 1.0, theta)
    safe_t2 = jnp.where(small, 1.0, theta2)
    a = jnp.where(small, 1.0 - theta2 / 6.0, jnp.sin(theta) / safe_t)
    b = jnp.where(small, 0.5 - theta2 / 24.0, (1.0 - jnp.cos(theta)) / safe_t2)
    wx, wy, wz = rvec[:, 0], rvec[:, 1], rvec[:, 2]
    zeros = jnp.zeros_like(wx)
    K = jnp.stack(
        [
            jnp.stack([zeros, -wz, wy], -1),
            jnp.stack([wz, zeros, -wx], -1),
            jnp.stack([-wy, wx, zeros], -1),
        ],
        axis=-2,
    )
    I = jnp.eye(3, dtype=rvec.dtype)[None]
    return I + a[:, None, None] * K + b[:, None, None] * (K @ K)


def _cdiv(a, b):
    return -(-a // b)


def _round_up(x, m):
    return _cdiv(x, m) * m


def _pick_tile_rows(rows_needed, batch, max_tile_rows):
    """Largest multiple of 8 <= max_tile_rows, shrunk only if the grid would
    otherwise have a single program (keep both v7x TensorCores busy)."""
    tile = min(max_tile_rows, _round_up(rows_needed, _SUBLANES))
    tile = max(_SUBLANES, (tile // _SUBLANES) * _SUBLANES)
    while tile > _SUBLANES and batch * _cdiv(rows_needed, tile) < 2:
        tile = max(_SUBLANES, ((tile // 2) // _SUBLANES) * _SUBLANES)
    return tile


def shading_forward(pts, rvec_w2c, t_w2c, params, *, max_tile_rows=1024):
    """pts: (B, N, 3) world points; rvec_w2c/t_w2c: (B, 3).  Returns (B, N)."""
    B, N, _ = pts.shape

    # ---- small per-batch pose / light glue (plain JAX) ----
    R_w2c = so3_exp(rvec_w2c)                                    # (B, 3, 3)
    R_c2w = jnp.swapaxes(R_w2c, -1, -2)
    t_c2w = -jnp.einsum("bij,bj->bi", R_c2w, t_w2c)
    p_l_in_w = jnp.einsum("bij,j->bi", R_c2w, params["t_l2c"]) + t_c2w

    cam = jnp.concatenate(
        [R_w2c.reshape(B, 9), t_w2c, t_c2w, p_l_in_w], axis=1
    ).astype(jnp.float32)                                        # (B, 18)

    # ---- precompute scalar-derived constants once, outside the kernel ----
    albedo = jnp.exp(params["albedo_log"])                       # albedo = exp(albedo_log)
    ambient = jnp.exp(params["ambient_light_log"])               # ambient = exp(ambient_log)
    rough = params["roughness"]
    alpha = rough * rough
    a2 = alpha * alpha
    k = 0.5 * alpha
    f0 = params["f0"]
    sigma = params["light_sigma"]
    glob = jnp.stack(
        [
            albedo, ambient, a2, k, 1.0 - k, f0, 1.0 - f0,
            params["kd"] / jnp.pi, params["ks"], params["light_intensity"],
            1.0 / (2.0 * sigma * sigma),
            params["light_mu"][0], params["light_mu"][1],
        ]
    ).astype(jnp.float32)                                        # (13,)
    glob_b = jnp.broadcast_to(glob[None], (B, 13))
    pad_col = jnp.zeros((B, 1), jnp.float32)
    scal = jnp.concatenate([cam, glob_b, pad_col], axis=1)       # (B, 32)
    scal = scal.reshape(B * _SCALARS_PER_BATCH)                  # flat, SMEM-friendly

    # ---- tiling: pad rows up to a tile multiple (single SoA transpose) ----
    rows_needed = _cdiv(N, _LANES)
    tile_rows = _pick_tile_rows(rows_needed, B, max_tile_rows)
    n_tiles = _cdiv(rows_needed, tile_rows)
    rows_padded = n_tiles * tile_rows
    Np = rows_padded * _LANES

    pts32 = pts.astype(jnp.float32)
    if Np != N:
        pts32 = jnp.pad(pts32, ((0, 0), (0, Np - N), (0, 0)), mode="edge")
    # one transpose pass -> SoA (B, 3, rows, 128); single DMA stream per tile
    p_soa = jnp.transpose(pts32, (0, 2, 1)).reshape(B, 3, rows_padded, _LANES)

    p_spec = pl.BlockSpec((None, 3, tile_rows, _LANES), lambda b, t, s: (b, 0, t, 0))
    out_spec = pl.BlockSpec((None, tile_rows, _LANES), lambda b, t, s: (b, t, 0))

    out = pl.pallas_call(
        _shading_kernel,
        out_shape=jax.ShapeDtypeStruct((B, rows_padded, _LANES), jnp.float32),
        grid_spec=pltpu.PrefetchScalarGridSpec(
            num_scalar_prefetch=1,
            grid=(B, n_tiles),
            in_specs=[p_spec],
            out_specs=out_spec,
        ),
        compiler_params=pltpu.CompilerParams(
            dimension_semantics=("parallel", "parallel")),
    )(scal, p_soa)

    return out.reshape(B, Np)[:, :N]


if __name__ == "__main__":
    key = jax.random.PRNGKey(0)
    B, N = 2, 1000   # non-multiple of 128 to exercise the padded tail path
    k1, k2, k3 = jax.random.split(key, 3)

    # points in front of the camera (z roughly in [1.5, 2.5])
    pts = jax.random.uniform(k1, (B, N, 3), minval=-0.5, maxval=0.5)
    pts = pts.at[..., 2].add(2.0)
    rvec_w2c = 0.05 * jax.random.normal(k2, (B, 3))
    t_w2c = 0.1 * jax.random.normal(k3, (B, 3))

    # Deterministic parameters.  NOTE: the PyTorch default albedo_log=100.0 makes
    # albedo = exp(100) overflow float32; a finite value is used here while keeping
    # the exp() semantics of the albedo / ambient_light properties.
    params = dict(
        albedo_log=jnp.float32(0.5),
        ambient_light_log=jnp.float32(0.1),
        roughness=jnp.float32(0.3),
        f0=jnp.float32(0.04),
        kd=jnp.float32(1.0),
        ks=jnp.float32(1.0),
        light_intensity=jnp.float32(10.0),
        light_sigma=jnp.float32(0.5),
        light_mu=jnp.array([0.0, 0.0], jnp.float32),
        t_l2c=jnp.array([0.0, 0.0, 0.0], jnp.float32),  # light at camera origin
    )

    out = shading_forward(
        pts.astype(jnp.float32),
        rvec_w2c.astype(jnp.float32),
        t_w2c.astype(jnp.float32),
        params,
    )
    out = jax.block_until_ready(out)
    assert out.shape == (B, N)
    assert bool(jnp.all(jnp.isfinite(out)))
    assert bool(jnp.all((out >= 0.0) & (out <= 255.0)))
    print("KERNEL_OK")
</pallas_src>

<mosaic_0001>
module attributes {stable_mosaic.version = 11 : i64} {
  func.func @_shading_kernel(%arg0: i32, %arg1: i32, %arg2: memref<64xf32, #tpu.memory_space<smem>>, %arg3: memref<1x3x8x128xf32, #tpu.memory_space<vmem>>, %arg4: memref<1x8x128xf32, #tpu.memory_space<vmem>>) attributes {dimension_semantics = [#tpu.dimension_semantics<parallel>, #tpu.dimension_semantics<parallel>], iteration_bounds = array<i64: 2, 1>, scalar_prefetch = 1 : i64, scratch_operands = 0 : i64, tpu.core_type = #tpu.core_type<tc>, window_params = [{transform_indices = @transform_0, window_bounds = array<i64: 1, 3, 8, 128>}, {transform_indices = @transform_1, window_bounds = array<i64: 1, 8, 128>}]} {
    %c32_i32 = arith.constant 32 : i32
    %0 = arith.muli %arg0, %c32_i32 : i32
    %c0_i32 = arith.constant 0 : i32
    %1 = arith.addi %0, %c0_i32 : i32
    %2 = arith.index_cast %1 : i32 to index
    %3 = memref.load %arg2[%2] : memref<64xf32, #tpu.memory_space<smem>>
    %c1_i32 = arith.constant 1 : i32
    %4 = arith.addi %0, %c1_i32 : i32
    %5 = arith.index_cast %4 : i32 to index
    %6 = memref.load %arg2[%5] : memref<64xf32, #tpu.memory_space<smem>>
    %c2_i32 = arith.constant 2 : i32
    %7 = arith.addi %0, %c2_i32 : i32
    %8 = arith.index_cast %7 : i32 to index
    %9 = memref.load %arg2[%8] : memref<64xf32, #tpu.memory_space<smem>>
    %c3_i32 = arith.constant 3 : i32
    %10 = arith.addi %0, %c3_i32 : i32
    %11 = arith.index_cast %10 : i32 to index
    %12 = memref.load %arg2[%11] : memref<64xf32, #tpu.memory_space<smem>>
    %c4_i32 = arith.constant 4 : i32
    %13 = arith.addi %0, %c4_i32 : i32
    %14 = arith.index_cast %13 : i32 to index
    %15 = memref.load %arg2[%14] : memref<64xf32, #tpu.memory_space<smem>>
    %c5_i32 = arith.constant 5 : i32
    %16 = arith.addi %0, %c5_i32 : i32
    %17 = arith.index_cast %16 : i32 to index
    %18 = memref.load %arg2[%17] : memref<64xf32, #tpu.memory_space<smem>>
    %c6_i32 = arith.constant 6 : i32
    %19 = arith.addi %0, %c6_i32 : i32
    %20 = arith.index_cast %19 : i32 to index
    %21 = memref.load %arg2[%20] : memref<64xf32, #tpu.memory_space<smem>>
    %c7_i32 = arith.constant 7 : i32
    %22 = arith.addi %0, %c7_i32 : i32
    %23 = arith.index_cast %22 : i32 to index
    %24 = memref.load %arg2[%23] : memref<64xf32, #tpu.memory_space<smem>>
    %c8_i32 = arith.constant 8 : i32
    %25 = arith.addi %0, %c8_i32 : i32
    %26 = arith.index_cast %25 : i32 to index
    %27 = memref.load %arg2[%26] : memref<64xf32, #tpu.memory_space<smem>>
    %c9_i32 = arith.constant 9 : i32
    %28 = arith.addi %0, %c9_i32 : i32
    %29 = arith.index_cast %28 : i32 to index
    %30 = memref.load %arg2[%29] : memref<64xf32, #tpu.memory_space<smem>>
    %c10_i32 = arith.constant 10 : i32
    %31 = arith.addi %0, %c10_i32 : i32
    %32 = arith.index_cast %31 : i32 to index
    %33 = memref.load %arg2[%32] : memref<64xf32, #tpu.memory_space<smem>>
    %c11_i32 = arith.constant 11 : i32
    %34 = arith.addi %0, %c11_i32 : i32
    %35 = arith.index_cast %34 : i32 to index
    %36 = memref.load %arg2[%35] : memref<64xf32, #tpu.memory_space<smem>>
    %c12_i32 = arith.constant 12 : i32
    %37 = arith.addi %0, %c12_i32 : i32
    %38 = arith.index_cast %37 : i32 to index
    %39 = memref.load %arg2[%38] : memref<64xf32, #tpu.memory_space<smem>>
    %c13_i32 = arith.constant 13 : i32
    %40 = arith.addi %0, %c13_i32 : i32
    %41 = arith.index_cast %40 : i32 to index
    %42 = memref.load %arg2[%41] : memref<64xf32, #tpu.memory_space<smem>>
    %c14_i32 = arith.constant 14 : i32
    %43 = arith.addi %0, %c14_i32 : i32
    %44 = arith.index_cast %43 : i32 to index
    %45 = memref.load %arg2[%44] : memref<64xf32, #tpu.memory_space<smem>>
    %c15_i32 = arith.constant 15 : i32
    %46 = arith.addi %0, %c15_i32 : i32
    %47 = arith.index_cast %46 : i32 to index
    %48 = memref.load %arg2[%47] : memref<64xf32, #tpu.memory_space<smem>>
    %c16_i32 = arith.constant 16 : i32
    %49 = arith.addi %0, %c16_i32 : i32
    %50 = arith.index_cast %49 : i32 to index
    %51 = memref.load %arg2[%50] : memref<64xf32, #tpu.memory_space<smem>>
    %c17_i32 = arith.constant 17 : i32
    %52 = arith.addi %0, %c17_i32 : i32
    %53 = arith.index_cast %52 : i32 to index
    %54 = memref.load %arg2[%53] : memref<64xf32, #tpu.memory_space<smem>>
    %c18_i32 = arith.constant 18 : i32
    %55 = arith.addi %0, %c18_i32 : i32
    %56 = arith.index_cast %55 : i32 to index
    %57 = memref.load %arg2[%56] : memref<64xf32, #tpu.memory_space<smem>>
    %c19_i32 = arith.constant 19 : i32
    %58 = arith.addi %0, %c19_i32 : i32
    %59 = arith.index_cast %58 : i32 to index
    %60 = memref.load %arg2[%59] : memref<64xf32, #tpu.memory_space<smem>>
    %c20_i32 = arith.constant 20 : i32
    %61 = arith.addi %0, %c20_i32 : i32
    %62 = arith.index_cast %61 : i32 to index
    %63 = memref.load %arg2[%62] : memref<64xf32, #tpu.memory_space<smem>>
    %c21_i32 = arith.constant 21 : i32
    %64 = arith.addi %0, %c21_i32 : i32
    %65 = arith.index_cast %64 : i32 to index
    %66 = memref.load %arg2[%65] : memref<64xf32, #tpu.memory_space<smem>>
    %c22_i32 = arith.constant 22 : i32
    %67 = arith.addi %0, %c22_i32 : i32
    %68 = arith.index_cast %67 : i32 to index
    %69 = memref.load %arg2[%68] : memref<64xf32, #tpu.memory_space<smem>>
    %c23_i32 = arith.constant 23 : i32
    %70 = arith.addi %0, %c23_i32 : i32
    %71 = arith.index_cast %70 : i32 to index
    %72 = memref.load %arg2[%71] : memref<64xf32, #tpu.memory_space<smem>>
    %c24_i32 = arith.constant 24 : i32
    %73 = arith.addi %0, %c24_i32 : i32
    %74 = arith.index_cast %73 : i32 to index
    %75 = memref.load %arg2[%74] : memref<64xf32, #tpu.memory_space<smem>>
    %c25_i32 = arith.constant 25 : i32
    %76 = arith.addi %0, %c25_i32 : i32
    %77 = arith.index_cast %76 : i32 to index
    %78 = memref.load %arg2[%77] : memref<64xf32, #tpu.memory_space<smem>>
    %c26_i32 = arith.constant 26 : i32
    %79 = arith.addi %0, %c26_i32 : i32
    %80 = arith.index_cast %79 : i32 to index
    %81 = memref.load %arg2[%80] : memref<64xf32, #tpu.memory_space<smem>>
    %c27_i32 = arith.constant 27 : i32
    %82 = arith.addi %0, %c27_i32 : i32
    %83 = arith.index_cast %82 : i32 to index
    %84 = memref.load %arg2[%83] : memref<64xf32, #tpu.memory_space<smem>>
    %c28_i32 = arith.constant 28 : i32
    %85 = arith.addi %0, %c28_i32 : i32
    %86 = arith.index_cast %85 : i32 to index
    %87 = memref.load %arg2[%86] : memref<64xf32, #tpu.memory_space<smem>>
    %c29_i32 = arith.constant 29 : i32
    %88 = arith.addi %0, %c29_i32 : i32
    %89 = arith.index_cast %88 : i32 to index
    %90 = memref.load %arg2[%89] : memref<64xf32, #tpu.memory_space<smem>>
    %c30_i32 = arith.constant 30 : i32
    %91 = arith.addi %0, %c30_i32 : i32
    %92 = arith.index_cast %91 : i32 to index
    %93 = memref.load %arg2[%92] : memref<64xf32, #tpu.memory_space<smem>>
    %c0 = arith.constant 0 : index
    %c0_0 = arith.constant 0 : index
    %c0_1 = arith.constant 0 : index
    %c0_2 = arith.constant 0 : index
    %94 = vector.load %arg3[%c0, %c0_0, %c0_1, %c0_2] : memref<1x3x8x128xf32, #tpu.memory_space<vmem>>, vector<1x1x8x128xf32>
    %95 = vector.shape_cast %94 : vector<1x1x8x128xf32> to vector<8x128xf32>
    %c0_3 = arith.constant 0 : index
    %c1 = arith.constant 1 : index
    %c0_4 = arith.constant 0 : index
    %c0_5 = arith.constant 0 : index
    %96 = vector.load %arg3[%c0_3, %c1, %c0_4, %c0_5] : memref<1x3x8x128xf32, #tpu.memory_space<vmem>>, vector<1x1x8x128xf32>
    %97 = vector.shape_cast %96 : vector<1x1x8x128xf32> to vector<8x128xf32>
    %c0_6 = arith.constant 0 : index
    %c2 = arith.constant 2 : index
    %c0_7 = arith.constant 0 : index
    %c0_8 = arith.constant 0 : index
    %98 = vector.load %arg3[%c0_6, %c2, %c0_7, %c0_8] : memref<1x3x8x128xf32, #tpu.memory_space<vmem>>, vector<1x1x8x128xf32>
    %99 = vector.shape_cast %98 : vector<1x1x8x128xf32> to vector<8x128xf32>
    %100 = vector.broadcast %3 : f32 to vector<8x128xf32>
    %101 = arith.mulf %100, %95 : vector<8x128xf32>
    %102 = vector.broadcast %6 : f32 to vector<8x128xf32>
    %103 = arith.mulf %102, %97 : vector<8x128xf32>
    %104 = arith.addf %101, %103 : vector<8x128xf32>
    %105 = vector.broadcast %9 : f32 to vector<8x128xf32>
    %106 = arith.mulf %105, %99 : vector<8x128xf32>
    %107 = arith.addf %104, %106 : vector<8x128xf32>
    %108 = vector.broadcast %30 : f32 to vector<8x128xf32>
    %109 = arith.addf %107, %108 : vector<8x128xf32>
    %110 = vector.broadcast %12 : f32 to vector<8x128xf32>
    %111 = arith.mulf %110, %95 : vector<8x128xf32>
    %112 = vector.broadcast %15 : f32 to vector<8x128xf32>
    %113 = arith.mulf %112, %97 : vector<8x128xf32>
    %114 = arith.addf %111, %113 : vector<8x128xf32>
    %115 = vector.broadcast %18 : f32 to vector<8x128xf32>
    %116 = arith.mulf %115, %99 : vector<8x128xf32>
    %117 = arith.addf %114, %116 : vector<8x128xf32>
    %118 = vector.broadcast %33 : f32 to vector<8x128xf32>
    %119 = arith.addf %117, %118 : vector<8x128xf32>
    %120 = vector.broadcast %21 : f32 to vector<8x128xf32>
    %121 = arith.mulf %120, %95 : vector<8x128xf32>
    %122 = vector.broadcast %24 : f32 to vector<8x128xf32>
    %123 = arith.mulf %122, %97 : vector<8x128xf32>
    %124 = arith.addf %121, %123 : vector<8x128xf32>
    %125 = vector.broadcast %27 : f32 to vector<8x128xf32>
    %126 = arith.mulf %125, %99 : vector<8x128xf32>
    %127 = arith.addf %124, %126 : vector<8x128xf32>
    %128 = vector.broadcast %36 : f32 to vector<8x128xf32>
    %129 = arith.addf %127, %128 : vector<8x128xf32>
    %cst = arith.constant 0.000000e+00 : f32
    %130 = vector.broadcast %cst : f32 to vector<8x128xf32>
    %131 = arith.cmpf oge, %129, %130 : vector<8x128xf32>
    %cst_9 = arith.constant 9.99999993E-9 : f32
    %cst_10 = arith.constant -9.99999993E-9 : f32
    %132 = vector.broadcast %cst_9 : f32 to vector<8x128xf32>
    %133 = vector.broadcast %cst_10 : f32 to vector<8x128xf32>
    %134 = arith.select %131, %132, %133 : vector<8x128xi1>, vector<8x128xf32>
    %135 = arith.addf %129, %134 : vector<8x128xf32>
    %136 = vector.broadcast %90 : f32 to vector<8x128xf32>
    %137 = arith.mulf %136, %135 : vector<8x128xf32>
    %138 = arith.subf %109, %137 : vector<8x128xf32>
    %139 = vector.broadcast %93 : f32 to vector<8x128xf32>
    %140 = arith.mulf %139, %135 : vector<8x128xf32>
    %141 = arith.subf %119, %140 : vector<8x128xf32>
    %142 = arith.mulf %138, %138 : vector<8x128xf32>
    %143 = arith.mulf %141, %141 : vector<8x128xf32>
    %144 = arith.addf %142, %143 : vector<8x128xf32>
    %145 = arith.mulf %135, %135 : vector<8x128xf32>
    %146 = vector.broadcast %48 : f32 to vector<8x128xf32>
    %147 = arith.subf %146, %95 : vector<8x128xf32>
    %148 = vector.broadcast %51 : f32 to vector<8x128xf32>
    %149 = arith.subf %148, %97 : vector<8x128xf32>
    %150 = vector.broadcast %54 : f32 to vector<8x128xf32>
    %151 = arith.subf %150, %99 : vector<8x128xf32>
    %152 = vector.broadcast %39 : f32 to vector<8x128xf32>
    %153 = arith.subf %152, %95 : vector<8x128xf32>
    %154 = vector.broadcast %42 : f32 to vector<8x128xf32>
    %155 = arith.subf %154, %97 : vector<8x128xf32>
    %156 = vector.broadcast %45 : f32 to vector<8x128xf32>
    %157 = arith.subf %156, %99 : vector<8x128xf32>
    %158 = arith.mulf %147, %147 : vector<8x128xf32>
    %159 = arith.mulf %149, %149 : vector<8x128xf32>
    %160 = arith.addf %158, %159 : vector<8x128xf32>
    %161 = arith.mulf %151, %151 : vector<8x128xf32>
    %162 = arith.addf %160, %161 : vector<8x128xf32>
    %cst_11 = arith.constant 9.99999993E-9 : f32
    %163 = vector.broadcast %cst_11 : f32 to vector<8x128xf32>
    %164 = arith.addf %162, %163 : vector<8x128xf32>
    %165 = math.rsqrt %164 : vector<8x128xf32>
    %166 = arith.mulf %153, %153 : vector<8x128xf32>
    %167 = arith.mulf %155, %155 : vector<8x128xf32>
    %168 = arith.addf %166, %167 : vector<8x128xf32>
    %169 = arith.mulf %157, %157 : vector<8x128xf32>
    %170 = arith.addf %168, %169 : vector<8x128xf32>
    %cst_12 = arith.constant 9.99999993E-9 : f32
    %171 = vector.broadcast %cst_12 : f32 to vector<8x128xf32>
    %172 = arith.addf %170, %171 : vector<8x128xf32>
    %173 = math.rsqrt %172 : vector<8x128xf32>
    %174 = arith.mulf %147, %165 : vector<8x128xf32>
    %175 = arith.mulf %149, %165 : vector<8x128xf32>
    %176 = arith.mulf %151, %165 : vector<8x128xf32>
    %177 = arith.mulf %153, %173 : vector<8x128xf32>
    %178 = arith.mulf %155, %173 : vector<8x128xf32>
    %179 = arith.mulf %157, %173 : vector<8x128xf32>
    %cst_13 = arith.constant 0.000000e+00 : f32
    %180 = vector.broadcast %cst_13 : f32 to vector<8x128xf32>
    %181 = arith.subf %180, %176 : vector<8x128xf32>
    %cst_14 = arith.constant 0.000000e+00 : f32
    %182 = vector.broadcast %cst_14 : f32 to vector<8x128xf32>
    %183 = arith.maximumf %181, %182 : vector<8x128xf32>
    %cst_15 = arith.constant 0.000000e+00 : f32
    %184 = vector.broadcast %cst_15 : f32 to vector<8x128xf32>
    %185 = arith.subf %184, %179 : vector<8x128xf32>
    %cst_16 = arith.constant 0.000000e+00 : f32
    %186 = vector.broadcast %cst_16 : f32 to vector<8x128xf32>
    %187 = arith.maximumf %185, %186 : vector<8x128xf32>
    %188 = arith.mulf %174, %177 : vector<8x128xf32>
    %189 = arith.mulf %175, %178 : vector<8x128xf32>
    %190 = arith.addf %188, %189 : vector<8x128xf32>
    %191 = arith.mulf %176, %179 : vector<8x128xf32>
    %192 = arith.addf %190, %191 : vector<8x128xf32>
    %cst_17 = arith.constant 2.000000e+00 : f32
    %193 = vector.broadcast %cst_17 : f32 to vector<8x128xf32>
    %194 = arith.mulf %193, %192 : vector<8x128xf32>
    %cst_18 = arith.constant 2.000000e+00 : f32
    %195 = vector.broadcast %cst_18 : f32 to vector<8x128xf32>
    %196 = arith.addf %195, %194 : vector<8x128xf32>
    %cst_19 = arith.constant 9.99999993E-9 : f32
    %197 = vector.broadcast %cst_19 : f32 to vector<8x128xf32>
    %198 = arith.addf %196, %197 : vector<8x128xf32>
    %199 = math.rsqrt %198 : vector<8x128xf32>
    %200 = arith.addf %176, %179 : vector<8x128xf32>
    %cst_20 = arith.constant 0.000000e+00 : f32
    %201 = vector.broadcast %cst_20 : f32 to vector<8x128xf32>
    %202 = arith.subf %201, %200 : vector<8x128xf32>
    %203 = arith.mulf %202, %199 : vector<8x128xf32>
    %cst_21 = arith.constant 0.000000e+00 : f32
    %204 = vector.broadcast %cst_21 : f32 to vector<8x128xf32>
    %205 = arith.maximumf %203, %204 : vector<8x128xf32>
    %cst_22 = arith.constant 1.000000e+00 : f32
    %206 = vector.broadcast %cst_22 : f32 to vector<8x128xf32>
    %207 = arith.addf %206, %192 : vector<8x128xf32>
    %208 = arith.mulf %207, %199 : vector<8x128xf32>
    %cst_23 = arith.constant 0.000000e+00 : f32
    %209 = vector.broadcast %cst_23 : f32 to vector<8x128xf32>
    %210 = arith.maximumf %208, %209 : vector<8x128xf32>
    %211 = arith.mulf %205, %205 : vector<8x128xf32>
    %cst_24 = arith.constant 1.000000e+00 : f32
    %212 = arith.subf %63, %cst_24 : f32
    %213 = vector.broadcast %212 : f32 to vector<8x128xf32>
    %214 = arith.mulf %211, %213 : vector<8x128xf32>
    %cst_25 = arith.constant 1.000000e+00 : f32
    %215 = vector.broadcast %cst_25 : f32 to vector<8x128xf32>
    %216 = arith.addf %214, %215 : vector<8x128xf32>
    %217 = vector.broadcast %69 : f32 to vector<8x128xf32>
    %218 = arith.mulf %187, %217 : vector<8x128xf32>
    %219 = vector.broadcast %66 : f32 to vector<8x128xf32>
    %220 = arith.addf %218, %219 : vector<8x128xf32>
    %221 = vector.broadcast %69 : f32 to vector<8x128xf32>
    %222 = arith.mulf %183, %221 : vector<8x128xf32>
    %223 = vector.broadcast %66 : f32 to vector<8x128xf32>
    %224 = arith.addf %222, %223 : vector<8x128xf32>
    %cst_26 = arith.constant 1.000000e+00 : f32
    %225 = vector.broadcast %cst_26 : f32 to vector<8x128xf32>
    %226 = arith.subf %225, %210 : vector<8x128xf32>
    %227 = arith.mulf %226, %226 : vector<8x128xf32>
    %228 = arith.mulf %227, %227 : vector<8x128xf32>
    %229 = arith.mulf %228, %226 : vector<8x128xf32>
    %230 = vector.broadcast %75 : f32 to vector<8x128xf32>
    %231 = arith.mulf %230, %229 : vector<8x128xf32>
    %232 = vector.broadcast %72 : f32 to vector<8x128xf32>
    %233 = arith.addf %232, %231 : vector<8x128xf32>
    %234 = arith.mulf %187, %183 : vector<8x128xf32>
    %cst_27 = arith.constant 12.566371 : f32
    %235 = vector.broadcast %cst_27 : f32 to vector<8x128xf32>
    %236 = arith.mulf %235, %216 : vector<8x128xf32>
    %237 = arith.mulf %236, %216 : vector<8x128xf32>
    %238 = arith.mulf %237, %220 : vector<8x128xf32>
    %239 = arith.mulf %238, %224 : vector<8x128xf32>
    %240 = arith.mulf %239, %234 : vector<8x128xf32>
    %cst_28 = arith.constant 9.99999993E-9 : f32
    %241 = vector.broadcast %cst_28 : f32 to vector<8x128xf32>
    %242 = arith.addf %240, %241 : vector<8x128xf32>
    %243 = arith.mulf %242, %145 : vector<8x128xf32>
    %244 = tpu.reciprocal %243 {approx = true} : vector<8x128xf32> -> vector<8x128xf32>
    %245 = arith.mulf %244, %145 : vector<8x128xf32>
    %246 = arith.mulf %244, %242 : vector<8x128xf32>
    %247 = vector.broadcast %63 : f32 to vector<8x128xf32>
    %248 = arith.mulf %247, %233 : vector<8x128xf32>
    %249 = arith.mulf %248, %234 : vector<8x128xf32>
    %250 = arith.mulf %249, %245 : vector<8x128xf32>
    %251 = vector.broadcast %81 : f32 to vector<8x128xf32>
    %252 = arith.mulf %251, %250 : vector<8x128xf32>
    %253 = vector.broadcast %78 : f32 to vector<8x128xf32>
    %254 = arith.addf %253, %252 : vector<8x128xf32>
    %255 = arith.mulf %254, %183 : vector<8x128xf32>
    %256 = arith.mulf %144, %246 : vector<8x128xf32>
    %cst_29 = arith.constant 0.000000e+00 : f32
    %257 = vector.broadcast %cst_29 : f32 to vector<8x128xf32>
    %258 = arith.subf %257, %256 : vector<8x128xf32>
    %259 = vector.broadcast %87 : f32 to vector<8x128xf32>
    %260 = arith.mulf %258, %259 : vector<8x128xf32>
    %261 = math.exp %260 : vector<8x128xf32>
    %262 = arith.mulf %165, %165 : vector<8x128xf32>
    %263 = vector.broadcast %84 : f32 to vector<8x128xf32>
    %264 = arith.mulf %263, %261 : vector<8x128xf32>
    %265 = arith.mulf %264, %262 : vector<8x128xf32>
    %266 = vector.broadcast %57 : f32 to vector<8x128xf32>
    %267 = arith.mulf %266, %255 : vector<8x128xf32>
    %268 = vector.broadcast %60 : f32 to vector<8x128xf32>
    %269 = arith.addf %265, %268 : vector<8x128xf32>
    %270 = arith.mulf %267, %269 : vector<8x128xf32>
    %cst_30 = arith.constant 0.000000e+00 : f32
    %cst_31 = arith.constant 2.550000e+02 : f32
    %271 = vector.broadcast %cst_30 : f32 to vector<8x128xf32>
    %272 = arith.maximumf %271, %270 : vector<8x128xf32>
    %273 = vector.broadcast %cst_31 : f32 to vector<8x128xf32>
    %274 = arith.minimumf %273, %272 : vector<8x128xf32>
    %c0_32 = arith.constant 0 : index
    %c0_33 = arith.constant 0 : index
    %c0_34 = arith.constant 0 : index
    %275 = vector.load %arg4[%c0_32, %c0_33, %c0_34] : memref<1x8x128xf32, #tpu.memory_space<vmem>>, vector<1x8x128xf32>
    %276 = vector.shape_cast %275 : vector<1x8x128xf32> to vector<8x128xf32>
    %277 = vector.shape_cast %274 : vector<8x128xf32> to vector<1x8x128xf32>
    tpu.vector_store %arg4[%c0_32, %c0_33, %c0_34], %277 {strides = array<i32>} : memref<1x8x128xf32, #tpu.memory_space<vmem>>, vector<1x8x128xf32>,
    return
  }
  func.func @transform_0(%arg0: i32, %arg1: i32, %arg2: memref<64xf32, #tpu.memory_space<smem>>) -> (i32, i32, i32, i32) {
    %c0_i32 = arith.constant 0 : i32
    %c0_i32_0 = arith.constant 0 : i32
    %c0_i32_1 = arith.constant 0 : i32
    return %arg0, %c0_i32, %arg1, %c0_i32_0 : i32, i32, i32, i32
  }
  func.func @transform_1(%arg0: i32, %arg1: i32, %arg2: memref<64xf32, #tpu.memory_space<smem>>) -> (i32, i32, i32) {
    %c0_i32 = arith.constant 0 : i32
    %c0_i32_0 = arith.constant 0 : i32
    return %arg0, %arg1, %c0_i32 : i32, i32, i32
  }
}

</mosaic_0001>

<bundles_post_ra>
// kernel: tpu_custom_call.1
= control target key start
LH: loop header
LB: loop body
LE: loop exit
PB: predicated region body
PF: predicated region fallthrough
CT: control target
= control target key end

     0   :  { %s981_s0 = inlined_call_operand.hbm [shape: f32[64], index: 0, kind: input, shape index: {}]   ;;  %s982_s1 = inlined_call_operand.hbm [shape: f32[2,3,8,128], index: 1, kind: input, shape index: {}]   ;;  %s983_s2 = inlined_call_operand.hbm [shape: f32[2,8,128], index: 2, kind: output, shape index: {}]  }
   0x1   :  { %s566_s11 = scalar_lea.hbm %s981_s0, 16 }
   0x2   :  { %p567_p0 = scmp.ne.s32.totalorder %s981_s0, %s566_s11  ;;  %p570_p1 = scmp.lt.u32.totalorder %s566_s11, %s981_s0 }
   0x4   :  { %p572_p2 = pnand %p570_p1, %p567_p0 }
   0x6   :  { %575 = shalt.err (!%p572_p2)  }
   0x7   :  { %s692_s16 = smov [#allocation3]  }
   0x8   :  { %8 = dma.hbm_to_smem %s981_s0, 16, %s692_s16, [#allocation2] }
   0x9   :  { %658 = dma.done.wait [#allocation2], 16 }
   0xa   :  { %659 = vsyncadd [#allocation2], 4294967280 }
   0xb   :  { %10 = sfence }
   0xc   :  { %11 = vsyncpa [#allocation5], 0 }
   0xd   :  { %13 = vsyncpa [#allocation5 + $0x1], 0 }
   0xe   :  { %14 = vsyncpa [#allocation6], 0 }
   0xf   :  { %16 = vsyncpa [#allocation6 + $0x1], 0  ;;  %s725_s19 = smov 0   ;;  %s727_s20 = smov 0  }
  0x10   :  { %s729_s21 = smov 0   ;;  %s731_s22 = smov 0  }
  0x11   :  { %s733_s23 = smov 0   ;;  %s735_s24 = smov 0  }
  0x12 LB: > { %s472_s0 = sadd.s32 4294967295, %s690_s24   ;;  %s473_s25 = sadd.s32 4294967294, %s690_s24   ;;  %s690_s24 = sphi %s735_s24, %s22_s24   ;;  %s686_s23 = sphi %s733_s23, %s998_s23   ;;  %s682_s22 = sphi %s731_s22, %s997_s22   ;;  %s678_s21 = sphi %s729_s21, %s996_s21   ;;  %s674_s20 = sphi %s727_s20, %s995_s20   ;;  %s670_s19 = sphi %s725_s19, %s994_s19  }
  0x13   : > { %s34_s26 = sadd.s32 1, %s686_s23  ;;  %s43_s27 = sadd.s32 1, %s678_s21 }
  0x14   : > { %p36_p3 = scmp.ge.s32.totalorder %s34_s26, 2  ;;  %p50_p4 = scmp.ne.s32.totalorder %s678_s21, %s674_s20 }
  0x15   : > { %p51_p5 = scmp.eq.s32.totalorder %s690_s24, 0  ;;  %p56_p6 = scmp.ne.s32.totalorder %s674_s20, %s670_s19 }
  0x16   : > { %s1000_s26 = smov (%p36_p3, %s34_s26), 0  ;;  %p57_p8 = scmp.eq.s32.totalorder %s472_s0, 0 }
  0x17   : > { %p766_p7 = por %p51_p5, %p50_p4  ;;  %s38_s29 = ssub.s32 %s686_s23, %s1000_s26 }
  0x18   : > { %p82_p9 = scmp.eq.s32.totalorder %s472_s0, 1  ;;  %p41_p10 = scmp.eq.s32.totalorder %s38_s29, 0 }
  0x19   : > { %p772_p11 = por %p57_p8, %p56_p6  ;;  %p88_p13 = scmp.eq.s32.totalorder %s473_s25, 1 }
  0x1a   : > { %p776_p12 = por %p82_p9, %p50_p4  ;;  %p502_p2 = scmp.lt.s32.totalorder %s690_s24, 2 }
  0x1b   : > { %s781_s4 = scalar_select %p41_p10, %s678_s21, %s43_s27  }
  0x1c   : > { %s987_s3 = scalar_select %p776_p12, 1, 0 }
  0x1d   : > { %p783_p0 = por %p88_p13, %p56_p6  ;;  %s108_s6 = sand.u32 1, %s678_s21  }
  0x1e   : > { %s487_s7 = smul.u32 24, %s108_s6  ;;  %p793_p3 = pnand %p502_p2, %p766_p7 }
  0x1f   : > { %s988_s5 = scalar_select %p783_p0, 1, 0 }
  0x20   : > { %s488_s8 = smul.u32 384, %s686_s23  ;;  %s112_s13 = scalar_lea.vmem [#allocation4], %s487_s7 }
  0x21   : > { %s120_s14 = sshll.u32 %s112_s13, 4  ;;  %s805_s15 = scalar_lea.sflag [#allocation5], %s108_s6  ;;  %s802_s14 = int_to_ptr.vmem [resolvable:$true] %s120_s14 }
  0x22   : > { %s800_s12 = scalar_lea.hbm %s982_s1, %s488_s8  ;;  %p578_p6 = pneg %p793_p3 }
  0x23   : > { %s576_s16 = scalar_lea.hbm %s800_s12, 384  ;;  %s581_s0 = scalar_lea.hbm %s982_s1, 768 }
  0x24   : > { %p577_p5 = scmp.ne.s32.totalorder %s800_s12, %s576_s16  ;;  %p582_p9 = scmp.lt.u32.totalorder %s800_s12, %s982_s1 }
  0x25   : > { %p583_p10 = scmp.lt.u32.totalorder %s581_s0, %s576_s16  ;;  %p585_p2 = scmp.lt.u32.totalorder %s576_s16, %s800_s12 }
  0x26   : > { %p579_p7 = pnand %p578_p6, %p577_p5 }
  0x27   : > { %p584_p13 = por %p583_p10, %p582_p9 }
  0x28   : > { %p580_p8 = pneg %p579_p7 }
  0x29   : > { %p586_p1 = por %p585_p2, %p584_p13 }
  0x2b   : > { %p587_p4 = pnand %p586_p1, %p580_p8 }
  0x2d   : > { %590 = shalt.err (!%p587_p4)
}
  0x2e   : > { %s591_s28 = scalar_lea.vmem %s802_s14, 384  ;;  %s693_s29 = smov [#allocation4]  }
  0x2f   : > { %p592_p5 = scmp.ne.s32.totalorder %s802_s14, %s591_s28  ;;  %s596_s6 = sshll.u32 %s693_s29, 4  ;;  %s597_s6 = int_to_ptr.vmem [resolvable:$false] %s596_s6 }
  0x30   : > { %s598_s7 = scalar_lea.vmem %s597_s6, 768  ;;  %p599_p12 = scmp.lt.s32.totalorder %s802_s14, %s597_s6 }
  0x31   : > { %p594_p7 = pnand %p592_p5, %p578_p6  ;;  %p600_p9 = scmp.lt.s32.totalorder %s598_s7, %s591_s28 }
  0x33   : > { %p595_p0 = pneg %p594_p7  ;;  %p601_p10 = por %p600_p9, %p599_p12 }
  0x35   : > { %p602_p13 = pnand %p601_p10, %p595_p0 }
  0x37   : > { %605 = shalt.err (!%p602_p13)
}
  0x38   : > { %s694_s8 = smov 128   ;;  %s695_s10 = smov 8  }
  0x39   : > { %497 = dma.hbm_to_vmem [thread:$0]  (!%p793_p3), %s800_s12, 384, %s802_s14, %s805_s15, %s694_s8, %s694_s8, %s695_s10  }
  0x3a   : > { %p128_p1 = scmp.lt.s32.totalorder %s690_s24, 3  ;;  %p990_p4 = scmp.ge.s32.totalorder %s690_s24, 1 }
  0x3c   : > { %p129_p6 = pnand %p990_p4, %p128_p1 }
  0x3d   : > { %s837_s11 = sand.u32 (!%p129_p6), 1, %s674_s20  }
  0x3e   : > { %132 = sbr.rel (%p129_p6) target bundleno = 222 (0xde), region = 24  ;;  %s135_s16 = scalar_lea.sflag (!%p129_p6), [#allocation5], %s837_s11 }
  0x3f   : > { %s489_s13 = smul.u32 (!%p129_p6), 24, %s837_s11 }
  0x41   : > { %s138_s17 = scalar_lea.vmem (!%p129_p6), [#allocation4], %s489_s13 }
  0x45   : > { %661 = dma.done.wait (%p772_p11), %s135_s16, 384  }
  0x46   : > { %663 = vsyncadd (%p772_p11), %s135_s16, 4294966912  ;;  %s846_s9 = sshll.u32 %s682_s22, 5  ;;  %v859_v0 = vld [vmem:[%s138_s17] sm:$0xff]  ;;  %v480_v3 = vld [vmem:[%s138_s17 + $0x8] sm:$0xff]  ;;  %v696_v57 = vmov -1e-08  }
  0x47   : > { %s158_s12 = sld [smem:[#allocation3 + %s846_s9]]  ;;  %s159_s14 = sadd.s32 1, %s846_s9  ;;  %v481_v4 = vld [vmem:[%s138_s17 + $0x10] sm:$0xff] }
  0x48   : > { %s161_s15 = sadd.s32 2, %s846_s9  ;;  %s160_s18 = sld [smem:[#allocation3 + %s159_s14]] }
  0x49   : > { %s162_s0 = sld [smem:[#allocation3 + %s161_s15]]  ;;  %s163_s25 = sadd.s32 3, %s846_s9 }
  0x4a   : > { %s165_s30 = sadd.s32 4, %s846_s9  ;;  %s164_s27 = sld [smem:[#allocation3 + %s163_s25]] }
  0x4b   : > { %s166_s28 = sld [smem:[#allocation3 + %s165_s30]]  ;;  %s167_s29 = sadd.s32 5, %s846_s9 }
  0x4c   : > { %s169_s6 = sadd.s32 6, %s846_s9  ;;  %s855_s7 = sld [smem:[#allocation3 + %s167_s29]] }
  0x4d   : > { %s857_s8 = sld [smem:[#allocation3 + %s169_s6]]  ;;  %v224_v1 = vstv %s158_s12  ;;  %s171_s10 = sadd.s32 7, %s846_s9 }
  0x4e   : > { %s173_s13 = sadd.s32 8, %s846_s9  ;;  %v225_v2 = vmul.f32 %v224_v1, %v859_v0  ;;  %s864_s16 = sld [smem:[#allocation3 + %s171_s10]]  ;;  %v226_v5 = vstv %s160_s18 }
  0x4f   : > { %s866_s14 = sld [smem:[#allocation3 + %s173_s13]]  ;;  %v229_v6 = vstv %s162_s0  ;;  %s175_s15 = sadd.s32 9, %s846_s9  ;;  %v227_v7 = vmul.f32 %v480_v3, %v226_v5 }
  0x50   : > { %s177_s25 = sadd.s32 10, %s846_s9  ;;  %v230_v8 = vmul.f32 %v481_v4, %v229_v6  ;;  %s870_s12 = sld [smem:[#allocation3 + %s175_s15]]  ;;  %v234_v9 = vstv %s164_s27 }
  0x51   : > { %s872_s30 = sld [smem:[#allocation3 + %s177_s25]]  ;;  %v236_v10 = vstv %s166_s28  ;;  %s179_s29 = sadd.s32 11, %s846_s9  ;;  %v228_v11 = vadd.f32 %v227_v7, %v225_v2  ;;  %v235_v12 = vmul.f32 %v234_v9, %v859_v0 }
  0x52   : > { %s181_s6 = sadd.s32 12, %s846_s9  ;;  %v237_v13 = vmul.f32 %v480_v3, %v236_v10  ;;  %s877_s17 = sld [smem:[#allocation3 + %s179_s29]]  ;;  %v239_v14 = vstv %s855_s7 }
  0x53   : > { %s182_s18 = sld [smem:[#allocation3 + %s181_s6]]  ;;  %v244_v15 = vstv %s857_s8  ;;  %s183_s0 = sadd.s32 13, %s846_s9  ;;  %v231_v16 = vadd.f32 %v230_v8, %v228_v11  ;;  %v240_v18 = vmul.f32 %v481_v4, %v239_v14 }
  0x54   : > { %s185_s10 = sadd.s32 14, %s846_s9  ;;  %v238_v17 = vadd.f32 %v237_v13, %v235_v12  ;;  %v245_v19 = vmul.f32 %v244_v15, %v859_v0  ;;  %s184_s27 = sld [smem:[#allocation3 + %s183_s0]]  ;;  %v246_v20 = vstv %s864_s16 }
  0x55   : > { %s186_s28 = sld [smem:[#allocation3 + %s185_s10]]  ;;  %v249_v21 = vstv %s866_s14  ;;  %s187_s13 = sadd.s32 15, %s846_s9  ;;  %v247_v23 = vmul.f32 %v480_v3, %v246_v20 }
  0x56   : > { %s189_s15 = sadd.s32 16, %s846_s9  ;;  %v241_v22 = vadd.f32 %v240_v18, %v238_v17  ;;  %s188_s7 = sld [smem:[#allocation3 + %s187_s13]]  ;;  %v232_v24 = vstv %s870_s12  ;;  %v250_v29 = vmul.f32 %v481_v4, %v249_v21 }
  0x57   : > { %s190_s8 = sld [smem:[#allocation3 + %s189_s15]]  ;;  %v242_v25 = vstv %s872_s30  ;;  %s191_s25 = sadd.s32 17, %s846_s9  ;;  %v233_v26 = vadd.f32 %v232_v24, %v231_v16  ;;  %v248_v28 = vadd.f32 %v247_v23, %v245_v19 }
  0x58   : > { %v243_v27 = vadd.f32 %v242_v25, %v241_v22  ;;  %s192_s29 = sld [smem:[#allocation3 + %s191_s25]]  ;;  %v252_v37 = vstv %s877_s17  ;;  %s215_s16 = sadd.s32 29, %s846_s9 }
  0x59   : > { %v273_v30 = vstv %s182_s18  ;;  %v251_v34 = vadd.f32 %v250_v29, %v248_v28  ;;  %s217_s14 = sadd.s32 30, %s846_s9  ;;  %s216_s12 = sld [smem:[#allocation3 + %s215_s16]] }
  0x5a   : > { %v274_v31 = vsub.f32 %v273_v30, %v859_v0  ;;  %v275_v32 = vstv %s184_s27  ;;  %s218_s30 = sld [smem:[#allocation3 + %s217_s14]]  ;;  %s197_s6 = sadd.s32 20, %s846_s9 }
  0x5b   : > { %v277_v33 = vstv %s186_s28  ;;  %v276_v35 = vsub.f32 %v275_v32, %v480_v3  ;;  %v253_v46 = vadd.f32 %v252_v37, %v251_v34  ;;  %s908_s17 = sld [smem:[#allocation3 + %s197_s6]]  ;;  %s201_s18 = sadd.s32 22, %s846_s9 }
  0x5c   : > { %v278_v36 = vsub.f32 %v277_v33, %v481_v4  ;;  %v267_v38 = vstv %s188_s7  ;;  %v286_v40 = vmul.f32 %v274_v31, %v274_v31  ;;  %s202_s0 = sld [smem:[#allocation3 + %s201_s18]]  ;;  %s199_s10 = sadd.s32 21, %s846_s9 }
  0x5d   : > { %v269_v39 = vstv %s190_s8  ;;  %v268_v41 = vsub.f32 %v267_v38, %v859_v0  ;;  %v287_v43 = vmul.f32 %v276_v35, %v276_v35  ;;  %vm254_vm0 = vcmp.ge.f32.partialorder %v253_v46, 0.0  ;;  %s200_s27 = sld [smem:[#allocation3 + %s199_s10]]  ;;  %s205_s13 = sadd.s32 24, %s846_s9 }
  0x5e   : > { %v270_v42 = vsub.f32 %v269_v39, %v480_v3  ;;  %v271_v44 = vstv %s192_s29  ;;  %v289_v45 = vmul.f32 %v278_v36, %v278_v36  ;;  %v255_v58 = vsel %vm254_vm0, 1e-08, %v696_v57  ;;  %s206_s15 = sld [smem:[#allocation3 + %s205_s13]]  ;;  %s203_s7 = sadd.s32 23, %s846_s9 }
  0x5f   : > { %v272_v47 = vsub.f32 %v271_v44, %v481_v4  ;;  %v279_v48 = vmul.f32 %v268_v41, %v268_v41  ;;  %v288_v50 = vadd.f32 %v287_v43, %v286_v40  ;;  %v896_v59 = vadd.f32 %v255_v58, %v253_v46  ;;  %s204_s8 = sld [smem:[#allocation3 + %s203_s7]]  ;;  %s213_s25 = sadd.s32 28, %s846_s9 }
  0x60   : > { %v280_v49 = vmul.f32 %v270_v42, %v270_v42  ;;  %v257_v60 = vstv %s216_s12  ;;  %v260_v61 = vstv %s218_s30  ;;  %s214_s29 = sld [smem:[#allocation3 + %s213_s25]]  ;;  %s209_s16 = sadd.s32 26, %s846_s9 }
  0x61   : > { %v282_v52 = vmul.f32 %v272_v47, %v272_v47  ;;  %v290_v53 = vadd.f32 %v289_v45, %v288_v50  ;;  %v258_v62 = vmul.f32 %v257_v60, %v896_v59  ;;  %v261_v63 = vmul.f32 %v260_v61, %v896_v59  ;;  %s482_s28 = sadd.f32 -1.0, %s908_s17  ;;  %s210_s14 = sld [smem:[#allocation3 + %s209_s16]] }
  0x62   : > { %v281_v51 = vadd.f32 %v280_v49, %v279_v48  ;;  %v324_v32 = vstv %s202_s0  ;;  %v266_v50 = vmul.f32 %v896_v59, %v896_v59  ;;  %v349_v61 = vstv %s908_s17  ;;  %s207_s12 = sadd.s32 25, %s846_s9  ;;  %s211_s6 = sadd.s32 27, %s846_s9 }
  0x63   : > { %v291_v55 = vadd.f32 1e-08, %v290_v53  ;;  %v259_v0 = vsub.f32 %v233_v26, %v258_v62  ;;  %v262_v1 = vsub.f32 %v243_v27, %v261_v63  ;;  %v326_v38 = vstv %s200_s27  ;;  %s208_s30 = sld [smem:[#allocation3 + %s207_s12]]  ;;  %s193_s17 = sadd.s32 18, %s846_s9 }
  0x64   : > { %v283_v54 = vadd.f32 %v282_v52, %v281_v51  ;;  %s212_s18 = sld [smem:[#allocation3 + %s211_s6]]  ;;  %s195_s0 = sadd.s32 19, %s846_s9 }
  0x65   : > { %556 = vrsqrt.f32 %v291_v55  ;;  %v263_v2 = vmul.f32 %v259_v0, %v259_v0  ;;  %v264_v3 = vmul.f32 %v262_v1, %v262_v1  ;;  %v336_v58 = vstv %s204_s8  ;;  %s194_s10 = sld [smem:[#allocation3 + %s193_s17]]  ;;  %s484_s9 = sshll.u32 %s682_s22, 7 }
  0x66   : > { %v284_v56 = vadd.f32 1e-08, %v283_v54  ;;  %s196_s27 = sld [smem:[#allocation3 + %s195_s0]]  ;;  %s932_s25 = scalar_lea.hbm %s983_s2, %s484_s9 }
  0x67   : > { %v902_v6 = vadd.f32 %v264_v3, %v263_v2  ;;  %v360_v3 = vstv %s214_s29  ;;  %s377_s29 = scalar_lea.sflag [#allocation6], %s837_s11  ;;  %p991_p12 = scmp.ne.s32.totalorder %s987_s3, 0 }
  0x68   : > { %558 = vrsqrt.f32 %v284_v56  ;;  %v334_v56 = vstv %s206_s15  ;;  %s697_s22 = smov [#allocation7]  }
  0x6f   : > { %v557_v4 = vpop.eup %556 }
  0x70   : > { %v296_v7 = vmul.f32 %v557_v4, %v274_v31  ;;  %v297_v8 = vmul.f32 %v557_v4, %v276_v35  ;;  %v298_v9 = vmul.f32 %v557_v4, %v278_v36  ;;  %v321_v31 = vstv %s482_s28  ;;  %s478_s28 = sshll.u32 %s837_s11, 3 }
  0x71   : > { %s156_s13 = scalar_lea.vmem [#allocation7], %s478_s28 }
  0x72   : > { %v900_v5 = vpop.eup %558  ;;  %v301_v23 = vsub.f32 0.0, %v298_v9  ;;  %s391_s15 = sshll.u32 %s156_s13, 4  ;;  %s934_s15 = int_to_ptr.vmem [resolvable:$true] %s391_s15 }
  0x73   : > { %v293_v10 = vmul.f32 %v900_v5, %v268_v41  ;;  %v294_v11 = vmul.f32 %v900_v5, %v270_v42  ;;  %v295_v12 = vmul.f32 %v900_v5, %v272_v47  ;;  %s606_s16 = scalar_lea.vmem %s934_s15, 128 }
  0x74   : > { %v302_v28 = vmax.f32 %v301_v23, 0.0  ;;  %p607_p11 = scmp.ne.s32.totalorder %s934_s15, %s606_s16 }
  0x75   : > { %v303_v13 = vmul.f32 %v296_v7, %v293_v10  ;;  %v304_v14 = vmul.f32 %v297_v8, %v294_v11  ;;  %v306_v15 = vmul.f32 %v298_v9, %v295_v12  ;;  %v312_v21 = vadd.f32 %v298_v9, %v295_v12 }
  0x76   : > { %v299_v26 = vsub.f32 0.0, %v295_v12  ;;  %v325_v37 = vmul.f32 %v324_v32, %v302_v28  ;;  %v353_v9 = vstv %s210_s14  ;;  %v355_v12 = vstv %s208_s30  ;;  %p608_p0 = pnand %p607_p11, %p991_p12  ;;  %s610_s14 = sshll.u32 %s697_s22, 4  ;;  %s611_s14 = int_to_ptr.vmem [resolvable:$false] %s610_s14 }
  0x77   : > { %v305_v16 = vadd.f32 %v304_v14, %v303_v13  ;;  %v313_v22 = vsub.f32 0.0, %v312_v21  ;;  %v365_v13 = vstv %s212_s18  ;;  %s612_s12 = scalar_lea.vmem %s611_s14, 256  ;;  %p613_p8 = scmp.lt.s32.totalorder %s934_s15, %s611_s14 }
  0x78   : > { %v300_v33 = vmax.f32 %v299_v26, 0.0  ;;  %v327_v41 = vadd.f32 %v326_v38, %v325_v37  ;;  %p609_p3 = pneg %p608_p0  ;;  %p614_p2 = scmp.lt.s32.totalorder %s612_s12, %s606_s16 }
  0x79   : > { %v307_v17 = vadd.f32 %v306_v15, %v305_v16  ;;  %v364_v15 = vmul.f32 %v900_v5, %v900_v5 }
  0x7a   : > { %v328_v40 = vmul.f32 %v324_v32, %v300_v33  ;;  %v338_v47 = vmul.f32 %v302_v28, %v300_v33  ;;  %p615_p5 = por %p614_p2, %p613_p8 }
  0x7b   : > { %v308_v18 = vmul.f32 2.0, %v307_v17  ;;  %v316_v24 = vadd.f32 1.0, %v307_v17  ;;  %v368_v17 = vstv %s194_s10 }
  0x7c   : > { %v329_v44 = vadd.f32 %v328_v40, %v326_v38  ;;  %p616_p7 = pnand %p615_p5, %p609_p3 }
  0x7d   : > { %v309_v19 = vadd.f32 2.0, %v308_v18 }
  0x7f   : > { %v310_v20 = vadd.f32 1e-08, %v309_v19  ;;  %v370_v19 = vstv %s196_s27 }
  0x81   : > { %560 = vrsqrt.f32 %v310_v20 }
  0x8b   : > { %v561_v25 = vpop.eup %560 }
  0x8c   : > { %v314_v27 = vmul.f32 %v561_v25, %v313_v22  ;;  %v317_v30 = vmul.f32 %v561_v25, %v316_v24 }
  0x8e   : > { %v315_v29 = vmax.f32 %v314_v27, 0.0  ;;  %v318_v35 = vmax.f32 %v317_v30, 0.0 }
  0x90   : > { %v319_v34 = vmul.f32 %v315_v29, %v315_v29  ;;  %v330_v42 = vsub.f32 1.0, %v318_v35 }
  0x92   : > { %v322_v36 = vmul.f32 %v321_v31, %v319_v34  ;;  %v331_v46 = vmul.f32 %v330_v42, %v330_v42 }
  0x94   : > { %v323_v39 = vadd.f32 1.0, %v322_v36  ;;  %v332_v51 = vmul.f32 %v331_v46, %v331_v46 }
  0x96   : > { %v339_v43 = vmul.f32 12.566371, %v323_v39  ;;  %v333_v54 = vmul.f32 %v332_v51, %v330_v42 }
  0x98   : > { %v340_v45 = vmul.f32 %v339_v43, %v323_v39  ;;  %v335_v57 = vmul.f32 %v334_v56, %v333_v54 }
  0x9a   : > { %v341_v48 = vmul.f32 %v340_v45, %v327_v41  ;;  %v337_v60 = vadd.f32 %v336_v58, %v335_v57 }
  0x9c   : > { %v342_v49 = vmul.f32 %v341_v48, %v329_v44  ;;  %v350_v59 = vmul.f32 %v349_v61, %v337_v60 }
  0x9e   : > { %v343_v52 = vmul.f32 %v342_v49, %v338_v47  ;;  %v351_v2 = vmul.f32 %v350_v59, %v338_v47 }
  0xa0   : > { %v344_v53 = vadd.f32 1e-08, %v343_v52 }
  0xa2   : > { %v345_v55 = vmul.f32 %v344_v53, %v266_v50 }
  0xa4   : > { %562 = vrcp.f32 %v345_v55 }
  0xae   : > { %v563_v62 = vpop.eup %562 }
  0xaf   : > { %v348_v63 = vmul.f32 %v563_v62, %v344_v53  ;;  %v347_v1 = vmul.f32 %v563_v62, %v266_v50 }
  0xb1   : > { %v358_v0 = vmul.f32 %v348_v63, %v902_v6  ;;  %v352_v8 = vmul.f32 %v351_v2, %v347_v1 }
  0xb3   : > { %v359_v4 = vsub.f32 0.0, %v358_v0  ;;  %v354_v11 = vmul.f32 %v353_v9, %v352_v8 }
  0xb5   : > { %v361_v7 = vmul.f32 %v360_v3, %v359_v4  ;;  %v356_v6 = vadd.f32 %v355_v12, %v354_v11 }
  0xb7   : > { %v362_v10 = vmul.f32 1.442695, %v361_v7  ;;  %v357_v14 = vmul.f32 %v356_v6, %v300_v33 }
  0xb9   : > { %564 = vpow2.f32 %v362_v10  ;;  %v369_v21 = vmul.f32 %v368_v17, %v357_v14 }
  0xc3   : > { %v565_v16 = vpop.eup %564 }
  0xc4   : > { %v366_v18 = vmul.f32 %v565_v16, %v365_v13 }
  0xc6   : > { %v367_v20 = vmul.f32 %v366_v18, %v364_v15 }
  0xc8   : > { %v371_v22 = vadd.f32 %v370_v19, %v367_v20 }
  0xca   : > { %v372_v23 = vmul.f32 %v371_v22, %v369_v21 }
  0xcc   : > { %v373_v24 = vmax.f32 %v372_v23, 0.0 }
  0xce   : > { %v374_v25 = vmin.f32 %v373_v24, 255.0 }
  0xd0   : > { %375 = vst [vmem:[%s156_s13] sm:$0xff] %v374_v25 }
  0xd1   : > { %619 = shalt.err (!%p616_p7)
}
  0xd2   : > { %s620_s11 = scalar_lea.hbm %s932_s25, 128  ;;  %s624_s17 = scalar_lea.hbm %s983_s2, 256 }
  0xd3   : > { %p621_p9 = scmp.ne.s32.totalorder %s932_s25, %s620_s11  ;;  %p625_p1 = scmp.lt.u32.totalorder %s932_s25, %s983_s2 }
  0xd4   : > { %p626_p4 = scmp.lt.u32.totalorder %s624_s17, %s620_s11  ;;  %p628_p11 = scmp.lt.u32.totalorder %s620_s11, %s932_s25 }
  0xd5   : > { %p622_p10 = pnand %p621_p9, %p991_p12 }
  0xd6   : > { %p627_p6 = por %p626_p4, %p625_p1 }
  0xd7   : > { %p623_p13 = pneg %p622_p10 }
  0xd8   : > { %p629_p0 = por %p628_p11, %p627_p6 }
  0xda   : > { %p630_p3 = pnand %p629_p0, %p623_p13 }
  0xdc   : > { %633 = shalt.err (!%p630_p3)
}
  0xdd   : > { %492 = dma.vmem_to_hbm [thread:$0]  (%p991_p12), %s934_s15, 128, %s932_s25, %s377_s29  }
  0xde PF: > { %s403_s10 = sand.u32 1, %s670_s19   ;;  %p992_p8 = scmp.ne.s32.totalorder %s988_s5, 0 }
  0xdf   : > { %p993_p2 = scmp.ge.s32.totalorder %s690_s24, 2  ;;  %s404_s27 = scalar_lea.sflag [#allocation6], %s403_s10 }
  0xe1   : > { %p499_p5 = pnand %p993_p2, %p992_p8 }
  0xe3   : > { %665 = dma.done.wait (!%p499_p5), %s404_s27, 128  }
  0xe4   : > { %667 = vsyncadd (!%p499_p5), %s404_s27, 4294967168  ;;  %s22_s24 = sadd.s32 1, %s690_s24   ;;  %s994_s19 = smov %s674_s20 }
  0xe5   : > { %p19_p7 = scmp.ge.s32.totalorder %s22_s24, 4   ;;  %s995_s20 = smov %s678_s21 }
  0xe6   : > { %s996_s21 = smov %s781_s4  ;;  %s997_s22 = smov %s686_s23 }
  0xe7   : > { %s998_s23 = smov %s1000_s26  ;;  %21 = sbr.rel (!%p19_p7) target bundleno = 18 (0x12), region = 71 }
  0xee   :  { %409 = vsyncpa [#allocation5], 1 }
  0xef   :  { %411 = vsyncpa [#allocation5 + $0x1], 1 }
  0xf0   :  { %412 = vsyncpa [#allocation6], 1 }
  0xf1   :  { %414 = vsyncpa [#allocation6 + $0x1], 1 }

</bundles_post_ra>
